<compile_context>
chip_gen: v7x
topology: tpu7x:2x2x1
jax: 0.10.0
libtpu: 0.0.40
codegen_flags: <defaults>
</compile_context>

<pallas_src>
import functools

import jax
import jax.numpy as jnp
from jax import lax
from jax.experimental import pallas as pl
from jax.experimental.pallas import tpu as pltpu


def autopad(k, p=None, d=1):
    """Pad to 'same' shape outputs (mirror of the PyTorch helper)."""
    if d > 1:
        k = d * (k - 1) + 1 if isinstance(k, int) else [d * (x - 1) + 1 for x in k]
    if p is None:
        p = k // 2 if isinstance(k, int) else [x // 2 for x in k]
    return p


def _pick_tile_ho(Ho, Wo, max_tile_rows=2048):
    """Rows per grid step: largest divisor of Ho giving a lane-dense (%128) tile."""
    best = Ho  # full-extent output block is always a legal BlockSpec
    for th in range(1, Ho + 1):
        if Ho % th:
            continue
        rows = th * Wo
        if rows % 128 == 0 and rows <= max_tile_rows:
            best = th
    return best


def _pick_rb(tile_ho, Wo, max_dot_lanes=512):
    """Output rows batched per MXU dot (N = rb*Wo lanes, 128-aligned if possible)."""
    best_aligned, best_any = 0, 1
    for rb in range(1, tile_ho + 1):
        if tile_ho % rb:
            continue
        lanes = rb * Wo
        if lanes > max_dot_lanes:
            break
        best_any = rb
        if lanes % 128 == 0:
            best_aligned = rb
    return best_aligned if best_aligned else best_any


# ----------------------------------------------------------------------------
# Pallas kernel: K-stacked, row-batched direct conv + BN shift + SiLU
# ----------------------------------------------------------------------------
def _make_conv_kernel(*, k, s, d, tile_ho, rb, T, Wo, C1, C2):
    k_eff = d * (k - 1) + 1
    rbw = rb * Wo                       # lanes per dot
    nblk = tile_ho // rb                # dots per grid step
    tile_rows = tile_ho * Wo
    slab_rows = ((rb - 1) * s + k_eff) * C1

    def lane_tap(slab2d, kw):
        # Static lane slice: columns kw*d + wo*s for wo in [0, Wo).
        if s == 1:
            return slab2d[:, kw * d: kw * d + Wo]
        # TODO(synk): s > 1 strided lane slicing of the loaded slab is untested.
        return slab2d[:, kw * d: kw * d + (Wo - 1) * s + 1: s]

    def kernel(x_ref, w_ref, shift_ref, o_ref, acc_ref):
        # x_ref:     (1, Hp*C1, Wp)      padded image, row-major (row, channel)
        # w_ref:     (C2, k*k*C1)        BN-scale-folded, K-stacked weight
        # shift_ref: (C2, 1)             BN shift (beta - mean*scale)
        # o_ref:     (1, C2, tile_rows)  channel-major, lane-dense output tile
        # acc_ref:   (C2, tile_rows)     f32 VMEM accumulator for this tile
        t = 0 if T == 1 else pl.program_id(1)
        w = w_ref[...]                              # hoisted out of the loop

        def row_block(jb, carry):
            row0 = (t * tile_ho + jb * rb) * s      # first padded input row used
            sub0 = row0 * C1
            if not isinstance(sub0, int):
                sub0 = pl.multiple_of(sub0, C1)
            # One dense sublane load covering all rows / taps of this block.
            slab = x_ref[0, pl.ds(sub0, slab_rows), :]        # (slab_rows, Wp)

            pieces = []
            if d == 1:
                # kh taps are sublane-contiguous: one (k*C1, Wo) slice per (kw, j).
                for kw in range(k):
                    rows = [lane_tap(slab[(j * s) * C1:(j * s) * C1 + k * C1, :], kw)
                            for j in range(rb)]
                    pieces.append(rows[0] if rb == 1
                                  else jnp.concatenate(rows, axis=1))
            else:
                for kh in range(k):
                    r_off = kh * d * C1
                    for kw in range(k):
                        rows = [lane_tap(
                            slab[(j * s) * C1 + r_off:(j * s) * C1 + r_off + C1, :],
                            kw) for j in range(rb)]
                        pieces.append(rows[0] if rb == 1
                                      else jnp.concatenate(rows, axis=1))
            patch = pieces[0] if len(pieces) == 1 else jnp.concatenate(pieces, axis=0)

            # One big MXU matmul per row block: (C2, k*k*C1) @ (k*k*C1, rb*Wo).
            res = jnp.dot(w, patch, preferred_element_type=jnp.float32,
                          precision=lax.Precision.HIGHEST)

            col0 = jb * rbw
            if not isinstance(col0, int):
                col0 = pl.multiple_of(col0, rbw)
            acc_ref[:, pl.ds(col0, rbw)] = res
            return carry

        if nblk == 1:
            row_block(0, 0)
        else:
            lax.fori_loop(0, nblk, row_block, 0)

        # Epilogue: BN shift + SiLU on the whole tile, one unmasked lane-dense
        # store.  sigmoid(y) = 0.5*(tanh(y/2)+1) -> EUP, no VPU divide.
        y = acc_ref[...] + shift_ref[...].astype(jnp.float32)
        y = y * (0.5 * (jnp.tanh(0.5 * y) + 1.0))
        o_ref[0, :, :] = y.astype(o_ref.dtype)

    return kernel


@functools.partial(jax.jit,
                   static_argnames=("k", "s", "p", "d", "eps", "compute_dtype"))
def conv_bn_silu(x, weight, gamma, beta, running_mean, running_var,
                 *, k, s, p, d, eps=1e-5, compute_dtype=None):
    """Equivalent of Conv.forward(x) in eval mode (g=1, bias=False).

    x:      (N, C1, H, W)  NCHW (like PyTorch)
    weight: (C2, C1, k, k) PyTorch Conv2d weight layout
    returns (N, C2, Ho, Wo)
    """
    N, C1, H, W = x.shape
    C2 = weight.shape[0]
    k_eff = d * (k - 1) + 1
    Ho = (H + 2 * p - k_eff) // s + 1
    Wo = (W + 2 * p - k_eff) // s + 1
    Hp, Wp = H + 2 * p, W + 2 * p

    # Inference-mode BN folded into the conv weight (scale) and a bias (shift).
    scale = gamma / jnp.sqrt(running_var + eps)                   # (C2,)
    shift = (beta - running_mean * scale).reshape(C2, 1)          # (C2, 1)
    w_scaled = weight * scale[:, None, None, None]                # (C2, C1, k, k)

    # Pre-flatten the weight to the K-stacked layout the kernel consumes.
    if d == 1:   # kernel stacks K as (kw, kh, c)
        w_flat = jnp.transpose(w_scaled, (0, 3, 2, 1)).reshape(C2, k * k * C1)
    else:        # kernel stacks K as (kh, kw, c)
        w_flat = jnp.transpose(w_scaled, (0, 2, 3, 1)).reshape(C2, k * k * C1)

    # Spatial zero-pad only (no im2col inflation in HBM), then merge (Hp, C1)
    # row-major so every input row is a contiguous C1-sublane block.
    x_pad = jnp.pad(x, ((0, 0), (0, 0), (p, p), (p, p)))          # (N, C1, Hp, Wp)
    x_merged = jnp.transpose(x_pad, (0, 2, 1, 3)).reshape(N, Hp * C1, Wp)

    if compute_dtype is not None:     # optional bf16 path, f32 accumulation
        x_merged = x_merged.astype(compute_dtype)
        w_flat = w_flat.astype(compute_dtype)

    tile_ho = _pick_tile_ho(Ho, Wo)
    T = Ho // tile_ho
    tile_rows = tile_ho * Wo
    rb = _pick_rb(tile_ho, Wo)

    kernel = _make_conv_kernel(k=k, s=s, d=d, tile_ho=tile_ho, rb=rb, T=T,
                               Wo=Wo, C1=C1, C2=C2)

    out = pl.pallas_call(
        kernel,
        out_shape=jax.ShapeDtypeStruct((N, C2, Ho * Wo), x.dtype),
        grid_spec=pltpu.PrefetchScalarGridSpec(
            num_scalar_prefetch=0,
            grid=(N, T),
            in_specs=[
                # Whole padded image resident per n (constant across t).
                # TODO(synk): C1/H halo tiling needed for very deep layers.
                pl.BlockSpec((1, Hp * C1, Wp), lambda n, t: (n, 0, 0)),
                # Grid-constant small operands.
                # TODO(synk): single-buffer these when weight VMEM matters.
                pl.BlockSpec((C2, k * k * C1), lambda n, t: (0, 0)),
                pl.BlockSpec((C2, 1), lambda n, t: (0, 0)),
            ],
            out_specs=pl.BlockSpec((1, C2, tile_rows), lambda n, t: (n, 0, t)),
            scratch_shapes=[pltpu.VMEM((C2, tile_rows), jnp.float32)],
        ),
        compiler_params=pltpu.CompilerParams(
            # Both axes independent -> v7x megacore can shard either.
            dimension_semantics=("parallel", "parallel"),
            vmem_limit_bytes=64 * 1024 * 1024),
    )(x_merged, w_flat, shift)

    # Free reshape back to NCHW (no transpose pass).
    return out.reshape(N, C2, Ho, Wo)


# ----------------------------------------------------------------------------
# Pure-JAX reference
# ----------------------------------------------------------------------------
def conv_bn_silu_ref(x, weight, gamma, beta, running_mean, running_var,
                     *, k, s, p, d, eps=1e-5):
    y = lax.conv_general_dilated(
        x, weight, window_strides=(s, s), padding=[(p, p), (p, p)],
        rhs_dilation=(d, d), dimension_numbers=("NCHW", "OIHW", "NCHW"),
        precision=lax.Precision.HIGHEST)
    scale = (gamma / jnp.sqrt(running_var + eps)).reshape(1, -1, 1, 1)
    shift = (beta - running_mean * gamma / jnp.sqrt(running_var + eps)
             ).reshape(1, -1, 1, 1)
    y = y * scale + shift
    return y * jax.nn.sigmoid(y)


if __name__ == "__main__":
    def make_params(key, c1, c2, kk):
        kx, kw_, kg, kb, km, kv = jax.random.split(key, 6)
        weight = 0.1 * jax.random.normal(kw_, (c2, c1, kk, kk), dtype=jnp.float32)
        gamma = 1.0 + 0.1 * jax.random.normal(kg, (c2,), dtype=jnp.float32)
        beta = 0.1 * jax.random.normal(kb, (c2,), dtype=jnp.float32)
        rmean = 0.1 * jax.random.normal(km, (c2,), dtype=jnp.float32)
        rvar = jnp.abs(1.0 + 0.1 * jax.random.normal(kv, (c2,), dtype=jnp.float32))
        return kx, weight, gamma, beta, rmean, rvar

    # --- Case 1: Conv(c1=4, c2=8, k=3, s=1) on (2, 4, 16, 16), f32 ---------
    c1, c2, k, s, d = 4, 8, 3, 1, 1
    p = autopad(k, None, d)
    kx, weight, gamma, beta, rmean, rvar = make_params(jax.random.PRNGKey(0), c1, c2, k)
    x = jax.random.normal(kx, (2, c1, 16, 16), dtype=jnp.float32)

    out = jax.block_until_ready(
        conv_bn_silu(x, weight, gamma, beta, rmean, rvar, k=k, s=s, p=p, d=d))
    ref = conv_bn_silu_ref(x, weight, gamma, beta, rmean, rvar, k=k, s=s, p=p, d=d)
    assert out.shape == (2, c2, 16, 16), out.shape
    err = float(jnp.max(jnp.abs(out - ref)))
    assert err < 2e-2, err

    # --- Case 2: same layer, bf16 compute path (f32 accumulation) ----------
    out_bf16 = jax.block_until_ready(
        conv_bn_silu(x, weight, gamma, beta, rmean, rvar, k=k, s=s, p=p, d=d,
                     compute_dtype=jnp.bfloat16))
    err_bf16 = float(jnp.max(jnp.abs(out_bf16 - ref)))
    assert err_bf16 < 1e-1, err_bf16

    # --- Case 3: Conv(c1=8, c2=16, k=3, s=1) on (1, 8, 48, 48): exercises
    #     T>1 grid tiles and the fori_loop row-block path ---------------------
    c1b, c2b = 8, 16
    kxb, weight_b, gamma_b, beta_b, rmean_b, rvar_b = make_params(
        jax.random.PRNGKey(1), c1b, c2b, k)
    xb = jax.random.normal(kxb, (1, c1b, 48, 48), dtype=jnp.float32)
    out_b = jax.block_until_ready(
        conv_bn_silu(xb, weight_b, gamma_b, beta_b, rmean_b, rvar_b,
                     k=k, s=s, p=p, d=d))
    ref_b = conv_bn_silu_ref(xb, weight_b, gamma_b, beta_b, rmean_b, rvar_b,
                             k=k, s=s, p=p, d=d)
    assert out_b.shape == (1, c2b, 48, 48), out_b.shape
    err_b = float(jnp.max(jnp.abs(out_b - ref_b)))
    assert err_b < 2e-2, err_b

    print("KERNEL_OK")
</pallas_src>

<mosaic_0001>
module attributes {stable_mosaic.version = 11 : i64} {
  func.func @kernel(%arg0: i32, %arg1: i32, %arg2: memref<1x72x18xf32, #tpu.memory_space<vmem>>, %arg3: memref<8x36xf32, #tpu.memory_space<vmem>>, %arg4: memref<8x1xf32, #tpu.memory_space<vmem>>, %arg5: memref<1x8x256xf32, #tpu.memory_space<vmem>>, %arg6: memref<8x256xf32, #tpu.memory_space<vmem>>) attributes {dimension_semantics = [#tpu.dimension_semantics<parallel>, #tpu.dimension_semantics<parallel>], iteration_bounds = array<i64: 2, 1>, scalar_prefetch = 0 : i64, scratch_operands = 1 : i64, tpu.core_type = #tpu.core_type<tc>, window_params = [{transform_indices = @transform_0, window_bounds = array<i64: 1, 72, 18>}, {pipeline_mode = #tpu.pipeline_mode<synchronous>, transform_indices = @transform_1, window_bounds = array<i64: 8, 36>}, {pipeline_mode = #tpu.pipeline_mode<synchronous>, transform_indices = @transform_2, window_bounds = array<i64: 8, 1>}, {transform_indices = @transform_3, window_bounds = array<i64: 1, 8, 256>}]} {
    %c0 = arith.constant 0 : index
    %c0_0 = arith.constant 0 : index
    %0 = vector.load %arg3[%c0, %c0_0] : memref<8x36xf32, #tpu.memory_space<vmem>>, vector<8x36xf32>
    %c0_1 = arith.constant 0 : index
    %c0_2 = arith.constant 0 : index
    %c0_3 = arith.constant 0 : index
    %1 = vector.load %arg2[%c0_1, %c0_2, %c0_3] : memref<1x72x18xf32, #tpu.memory_space<vmem>>, vector<1x72x18xf32>
    %2 = vector.shape_cast %1 : vector<1x72x18xf32> to vector<72x18xf32>
    %3 = vector.extract_strided_slice %2 {offsets = [0, 0], sizes = [12, 18], strides = [1, 1]} : vector<72x18xf32> to vector<12x18xf32>
    %4 = vector.extract_strided_slice %3 {offsets = [0, 0], sizes = [12, 16], strides = [1, 1]} : vector<12x18xf32> to vector<12x16xf32>
    %5 = vector.extract_strided_slice %2 {offsets = [4, 0], sizes = [12, 18], strides = [1, 1]} : vector<72x18xf32> to vector<12x18xf32>
    %6 = vector.extract_strided_slice %5 {offsets = [0, 0], sizes = [12, 16], strides = [1, 1]} : vector<12x18xf32> to vector<12x16xf32>
    %7 = vector.extract_strided_slice %2 {offsets = [8, 0], sizes = [12, 18], strides = [1, 1]} : vector<72x18xf32> to vector<12x18xf32>
    %8 = vector.extract_strided_slice %7 {offsets = [0, 0], sizes = [12, 16], strides = [1, 1]} : vector<12x18xf32> to vector<12x16xf32>
    %9 = vector.extract_strided_slice %2 {offsets = [12, 0], sizes = [12, 18], strides = [1, 1]} : vector<72x18xf32> to vector<12x18xf32>
    %10 = vector.extract_strided_slice %9 {offsets = [0, 0], sizes = [12, 16], strides = [1, 1]} : vector<12x18xf32> to vector<12x16xf32>
    %11 = vector.extract_strided_slice %2 {offsets = [16, 0], sizes = [12, 18], strides = [1, 1]} : vector<72x18xf32> to vector<12x18xf32>
    %12 = vector.extract_strided_slice %11 {offsets = [0, 0], sizes = [12, 16], strides = [1, 1]} : vector<12x18xf32> to vector<12x16xf32>
    %13 = vector.extract_strided_slice %2 {offsets = [20, 0], sizes = [12, 18], strides = [1, 1]} : vector<72x18xf32> to vector<12x18xf32>
    %14 = vector.extract_strided_slice %13 {offsets = [0, 0], sizes = [12, 16], strides = [1, 1]} : vector<12x18xf32> to vector<12x16xf32>
    %15 = vector.extract_strided_slice %2 {offsets = [24, 0], sizes = [12, 18], strides = [1, 1]} : vector<72x18xf32> to vector<12x18xf32>
    %16 = vector.extract_strided_slice %15 {offsets = [0, 0], sizes = [12, 16], strides = [1, 1]} : vector<12x18xf32> to vector<12x16xf32>
    %17 = vector.extract_strided_slice %2 {offsets = [28, 0], sizes = [12, 18], strides = [1, 1]} : vector<72x18xf32> to vector<12x18xf32>
    %18 = vector.extract_strided_slice %17 {offsets = [0, 0], sizes = [12, 16], strides = [1, 1]} : vector<12x18xf32> to vector<12x16xf32>
    %19 = vector.extract_strided_slice %2 {offsets = [32, 0], sizes = [12, 18], strides = [1, 1]} : vector<72x18xf32> to vector<12x18xf32>
    %20 = vector.extract_strided_slice %19 {offsets = [0, 0], sizes = [12, 16], strides = [1, 1]} : vector<12x18xf32> to vector<12x16xf32>
    %21 = vector.extract_strided_slice %2 {offsets = [36, 0], sizes = [12, 18], strides = [1, 1]} : vector<72x18xf32> to vector<12x18xf32>
    %22 = vector.extract_strided_slice %21 {offsets = [0, 0], sizes = [12, 16], strides = [1, 1]} : vector<12x18xf32> to vector<12x16xf32>
    %23 = vector.extract_strided_slice %2 {offsets = [40, 0], sizes = [12, 18], strides = [1, 1]} : vector<72x18xf32> to vector<12x18xf32>
    %24 = vector.extract_strided_slice %23 {offsets = [0, 0], sizes = [12, 16], strides = [1, 1]} : vector<12x18xf32> to vector<12x16xf32>
    %25 = vector.extract_strided_slice %2 {offsets = [44, 0], sizes = [12, 18], strides = [1, 1]} : vector<72x18xf32> to vector<12x18xf32>
    %26 = vector.extract_strided_slice %25 {offsets = [0, 0], sizes = [12, 16], strides = [1, 1]} : vector<12x18xf32> to vector<12x16xf32>
    %27 = vector.extract_strided_slice %2 {offsets = [48, 0], sizes = [12, 18], strides = [1, 1]} : vector<72x18xf32> to vector<12x18xf32>
    %28 = vector.extract_strided_slice %27 {offsets = [0, 0], sizes = [12, 16], strides = [1, 1]} : vector<12x18xf32> to vector<12x16xf32>
    %29 = vector.extract_strided_slice %2 {offsets = [52, 0], sizes = [12, 18], strides = [1, 1]} : vector<72x18xf32> to vector<12x18xf32>
    %30 = vector.extract_strided_slice %29 {offsets = [0, 0], sizes = [12, 16], strides = [1, 1]} : vector<12x18xf32> to vector<12x16xf32>
    %31 = vector.extract_strided_slice %2 {offsets = [56, 0], sizes = [12, 18], strides = [1, 1]} : vector<72x18xf32> to vector<12x18xf32>
    %32 = vector.extract_strided_slice %31 {offsets = [0, 0], sizes = [12, 16], strides = [1, 1]} : vector<12x18xf32> to vector<12x16xf32>
    %33 = vector.extract_strided_slice %2 {offsets = [60, 0], sizes = [12, 18], strides = [1, 1]} : vector<72x18xf32> to vector<12x18xf32>
    %34 = vector.extract_strided_slice %33 {offsets = [0, 0], sizes = [12, 16], strides = [1, 1]} : vector<12x18xf32> to vector<12x16xf32>
    %35 = tpu.concatenate %4, %6, %8, %10, %12, %14, %16, %18, %20, %22, %24, %26, %28, %30, %32, %34 in 1 : vector<12x16xf32>, vector<12x16xf32>, vector<12x16xf32>, vector<12x16xf32>, vector<12x16xf32>, vector<12x16xf32>, vector<12x16xf32>, vector<12x16xf32>, vector<12x16xf32>, vector<12x16xf32>, vector<12x16xf32>, vector<12x16xf32>, vector<12x16xf32>, vector<12x16xf32>, vector<12x16xf32>, vector<12x16xf32> -> vector<12x256xf32>
    %36 = vector.extract_strided_slice %2 {offsets = [0, 0], sizes = [12, 18], strides = [1, 1]} : vector<72x18xf32> to vector<12x18xf32>
    %37 = vector.extract_strided_slice %36 {offsets = [0, 1], sizes = [12, 16], strides = [1, 1]} : vector<12x18xf32> to vector<12x16xf32>
    %38 = vector.extract_strided_slice %2 {offsets = [4, 0], sizes = [12, 18], strides = [1, 1]} : vector<72x18xf32> to vector<12x18xf32>
    %39 = vector.extract_strided_slice %38 {offsets = [0, 1], sizes = [12, 16], strides = [1, 1]} : vector<12x18xf32> to vector<12x16xf32>
    %40 = vector.extract_strided_slice %2 {offsets = [8, 0], sizes = [12, 18], strides = [1, 1]} : vector<72x18xf32> to vector<12x18xf32>
    %41 = vector.extract_strided_slice %40 {offsets = [0, 1], sizes = [12, 16], strides = [1, 1]} : vector<12x18xf32> to vector<12x16xf32>
    %42 = vector.extract_strided_slice %2 {offsets = [12, 0], sizes = [12, 18], strides = [1, 1]} : vector<72x18xf32> to vector<12x18xf32>
    %43 = vector.extract_strided_slice %42 {offsets = [0, 1], sizes = [12, 16], strides = [1, 1]} : vector<12x18xf32> to vector<12x16xf32>
    %44 = vector.extract_strided_slice %2 {offsets = [16, 0], sizes = [12, 18], strides = [1, 1]} : vector<72x18xf32> to vector<12x18xf32>
    %45 = vector.extract_strided_slice %44 {offsets = [0, 1], sizes = [12, 16], strides = [1, 1]} : vector<12x18xf32> to vector<12x16xf32>
    %46 = vector.extract_strided_slice %2 {offsets = [20, 0], sizes = [12, 18], strides = [1, 1]} : vector<72x18xf32> to vector<12x18xf32>
    %47 = vector.extract_strided_slice %46 {offsets = [0, 1], sizes = [12, 16], strides = [1, 1]} : vector<12x18xf32> to vector<12x16xf32>
    %48 = vector.extract_strided_slice %2 {offsets = [24, 0], sizes = [12, 18], strides = [1, 1]} : vector<72x18xf32> to vector<12x18xf32>
    %49 = vector.extract_strided_slice %48 {offsets = [0, 1], sizes = [12, 16], strides = [1, 1]} : vector<12x18xf32> to vector<12x16xf32>
    %50 = vector.extract_strided_slice %2 {offsets = [28, 0], sizes = [12, 18], strides = [1, 1]} : vector<72x18xf32> to vector<12x18xf32>
    %51 = vector.extract_strided_slice %50 {offsets = [0, 1], sizes = [12, 16], strides = [1, 1]} : vector<12x18xf32> to vector<12x16xf32>
    %52 = vector.extract_strided_slice %2 {offsets = [32, 0], sizes = [12, 18], strides = [1, 1]} : vector<72x18xf32> to vector<12x18xf32>
    %53 = vector.extract_strided_slice %52 {offsets = [0, 1], sizes = [12, 16], strides = [1, 1]} : vector<12x18xf32> to vector<12x16xf32>
    %54 = vector.extract_strided_slice %2 {offsets = [36, 0], sizes = [12, 18], strides = [1, 1]} : vector<72x18xf32> to vector<12x18xf32>
    %55 = vector.extract_strided_slice %54 {offsets = [0, 1], sizes = [12, 16], strides = [1, 1]} : vector<12x18xf32> to vector<12x16xf32>
    %56 = vector.extract_strided_slice %2 {offsets = [40, 0], sizes = [12, 18], strides = [1, 1]} : vector<72x18xf32> to vector<12x18xf32>
    %57 = vector.extract_strided_slice %56 {offsets = [0, 1], sizes = [12, 16], strides = [1, 1]} : vector<12x18xf32> to vector<12x16xf32>
    %58 = vector.extract_strided_slice %2 {offsets = [44, 0], sizes = [12, 18], strides = [1, 1]} : vector<72x18xf32> to vector<12x18xf32>
    %59 = vector.extract_strided_slice %58 {offsets = [0, 1], sizes = [12, 16], strides = [1, 1]} : vector<12x18xf32> to vector<12x16xf32>
    %60 = vector.extract_strided_slice %2 {offsets = [48, 0], sizes = [12, 18], strides = [1, 1]} : vector<72x18xf32> to vector<12x18xf32>
    %61 = vector.extract_strided_slice %60 {offsets = [0, 1], sizes = [12, 16], strides = [1, 1]} : vector<12x18xf32> to vector<12x16xf32>
    %62 = vector.extract_strided_slice %2 {offsets = [52, 0], sizes = [12, 18], strides = [1, 1]} : vector<72x18xf32> to vector<12x18xf32>
    %63 = vector.extract_strided_slice %62 {offsets = [0, 1], sizes = [12, 16], strides = [1, 1]} : vector<12x18xf32> to vector<12x16xf32>
    %64 = vector.extract_strided_slice %2 {offsets = [56, 0], sizes = [12, 18], strides = [1, 1]} : vector<72x18xf32> to vector<12x18xf32>
    %65 = vector.extract_strided_slice %64 {offsets = [0, 1], sizes = [12, 16], strides = [1, 1]} : vector<12x18xf32> to vector<12x16xf32>
    %66 = vector.extract_strided_slice %2 {offsets = [60, 0], sizes = [12, 18], strides = [1, 1]} : vector<72x18xf32> to vector<12x18xf32>
    %67 = vector.extract_strided_slice %66 {offsets = [0, 1], sizes = [12, 16], strides = [1, 1]} : vector<12x18xf32> to vector<12x16xf32>
    %68 = tpu.concatenate %37, %39, %41, %43, %45, %47, %49, %51, %53, %55, %57, %59, %61, %63, %65, %67 in 1 : vector<12x16xf32>, vector<12x16xf32>, vector<12x16xf32>, vector<12x16xf32>, vector<12x16xf32>, vector<12x16xf32>, vector<12x16xf32>, vector<12x16xf32>, vector<12x16xf32>, vector<12x16xf32>, vector<12x16xf32>, vector<12x16xf32>, vector<12x16xf32>, vector<12x16xf32>, vector<12x16xf32>, vector<12x16xf32> -> vector<12x256xf32>
    %69 = vector.extract_strided_slice %2 {offsets = [0, 0], sizes = [12, 18], strides = [1, 1]} : vector<72x18xf32> to vector<12x18xf32>
    %70 = vector.extract_strided_slice %69 {offsets = [0, 2], sizes = [12, 16], strides = [1, 1]} : vector<12x18xf32> to vector<12x16xf32>
    %71 = vector.extract_strided_slice %2 {offsets = [4, 0], sizes = [12, 18], strides = [1, 1]} : vector<72x18xf32> to vector<12x18xf32>
    %72 = vector.extract_strided_slice %71 {offsets = [0, 2], sizes = [12, 16], strides = [1, 1]} : vector<12x18xf32> to vector<12x16xf32>
    %73 = vector.extract_strided_slice %2 {offsets = [8, 0], sizes = [12, 18], strides = [1, 1]} : vector<72x18xf32> to vector<12x18xf32>
    %74 = vector.extract_strided_slice %73 {offsets = [0, 2], sizes = [12, 16], strides = [1, 1]} : vector<12x18xf32> to vector<12x16xf32>
    %75 = vector.extract_strided_slice %2 {offsets = [12, 0], sizes = [12, 18], strides = [1, 1]} : vector<72x18xf32> to vector<12x18xf32>
    %76 = vector.extract_strided_slice %75 {offsets = [0, 2], sizes = [12, 16], strides = [1, 1]} : vector<12x18xf32> to vector<12x16xf32>
    %77 = vector.extract_strided_slice %2 {offsets = [16, 0], sizes = [12, 18], strides = [1, 1]} : vector<72x18xf32> to vector<12x18xf32>
    %78 = vector.extract_strided_slice %77 {offsets = [0, 2], sizes = [12, 16], strides = [1, 1]} : vector<12x18xf32> to vector<12x16xf32>
    %79 = vector.extract_strided_slice %2 {offsets = [20, 0], sizes = [12, 18], strides = [1, 1]} : vector<72x18xf32> to vector<12x18xf32>
    %80 = vector.extract_strided_slice %79 {offsets = [0, 2], sizes = [12, 16], strides = [1, 1]} : vector<12x18xf32> to vector<12x16xf32>
    %81 = vector.extract_strided_slice %2 {offsets = [24, 0], sizes = [12, 18], strides = [1, 1]} : vector<72x18xf32> to vector<12x18xf32>
    %82 = vector.extract_strided_slice %81 {offsets = [0, 2], sizes = [12, 16], strides = [1, 1]} : vector<12x18xf32> to vector<12x16xf32>
    %83 = vector.extract_strided_slice %2 {offsets = [28, 0], sizes = [12, 18], strides = [1, 1]} : vector<72x18xf32> to vector<12x18xf32>
    %84 = vector.extract_strided_slice %83 {offsets = [0, 2], sizes = [12, 16], strides = [1, 1]} : vector<12x18xf32> to vector<12x16xf32>
    %85 = vector.extract_strided_slice %2 {offsets = [32, 0], sizes = [12, 18], strides = [1, 1]} : vector<72x18xf32> to vector<12x18xf32>
    %86 = vector.extract_strided_slice %85 {offsets = [0, 2], sizes = [12, 16], strides = [1, 1]} : vector<12x18xf32> to vector<12x16xf32>
    %87 = vector.extract_strided_slice %2 {offsets = [36, 0], sizes = [12, 18], strides = [1, 1]} : vector<72x18xf32> to vector<12x18xf32>
    %88 = vector.extract_strided_slice %87 {offsets = [0, 2], sizes = [12, 16], strides = [1, 1]} : vector<12x18xf32> to vector<12x16xf32>
    %89 = vector.extract_strided_slice %2 {offsets = [40, 0], sizes = [12, 18], strides = [1, 1]} : vector<72x18xf32> to vector<12x18xf32>
    %90 = vector.extract_strided_slice %89 {offsets = [0, 2], sizes = [12, 16], strides = [1, 1]} : vector<12x18xf32> to vector<12x16xf32>
    %91 = vector.extract_strided_slice %2 {offsets = [44, 0], sizes = [12, 18], strides = [1, 1]} : vector<72x18xf32> to vector<12x18xf32>
    %92 = vector.extract_strided_slice %91 {offsets = [0, 2], sizes = [12, 16], strides = [1, 1]} : vector<12x18xf32> to vector<12x16xf32>
    %93 = vector.extract_strided_slice %2 {offsets = [48, 0], sizes = [12, 18], strides = [1, 1]} : vector<72x18xf32> to vector<12x18xf32>
    %94 = vector.extract_strided_slice %93 {offsets = [0, 2], sizes = [12, 16], strides = [1, 1]} : vector<12x18xf32> to vector<12x16xf32>
    %95 = vector.extract_strided_slice %2 {offsets = [52, 0], sizes = [12, 18], strides = [1, 1]} : vector<72x18xf32> to vector<12x18xf32>
    %96 = vector.extract_strided_slice %95 {offsets = [0, 2], sizes = [12, 16], strides = [1, 1]} : vector<12x18xf32> to vector<12x16xf32>
    %97 = vector.extract_strided_slice %2 {offsets = [56, 0], sizes = [12, 18], strides = [1, 1]} : vector<72x18xf32> to vector<12x18xf32>
    %98 = vector.extract_strided_slice %97 {offsets = [0, 2], sizes = [12, 16], strides = [1, 1]} : vector<12x18xf32> to vector<12x16xf32>
    %99 = vector.extract_strided_slice %2 {offsets = [60, 0], sizes = [12, 18], strides = [1, 1]} : vector<72x18xf32> to vector<12x18xf32>
    %100 = vector.extract_strided_slice %99 {offsets = [0, 2], sizes = [12, 16], strides = [1, 1]} : vector<12x18xf32> to vector<12x16xf32>
    %101 = tpu.concatenate %70, %72, %74, %76, %78, %80, %82, %84, %86, %88, %90, %92, %94, %96, %98, %100 in 1 : vector<12x16xf32>, vector<12x16xf32>, vector<12x16xf32>, vector<12x16xf32>, vector<12x16xf32>, vector<12x16xf32>, vector<12x16xf32>, vector<12x16xf32>, vector<12x16xf32>, vector<12x16xf32>, vector<12x16xf32>, vector<12x16xf32>, vector<12x16xf32>, vector<12x16xf32>, vector<12x16xf32>, vector<12x16xf32> -> vector<12x256xf32>
    %102 = tpu.concatenate %35, %68, %101 in 0 : vector<12x256xf32>, vector<12x256xf32>, vector<12x256xf32> -> vector<36x256xf32>
    %cst = arith.constant dense<0.000000e+00> : vector<8x256xf32>
    %103 = tpu.matmul %0, %102, %cst {dimension_numbers = #tpu.dot_dimension_numbers<[1], [0], [0], [1], [0, 0, 1, 1], [], []>, precision = #tpu.contract_precision<fp32>} : vector<8x36xf32>, vector<36x256xf32>, vector<8x256xf32> -> vector<8x256xf32>
    %c0_4 = arith.constant 0 : index
    %c0_5 = arith.constant 0 : index
    %104 = vector.load %arg6[%c0_4, %c0_5] : memref<8x256xf32, #tpu.memory_space<vmem>>, vector<8x256xf32>
    tpu.vector_store %arg6[%c0_4, %c0_5], %103 {strides = array<i32>} : memref<8x256xf32, #tpu.memory_space<vmem>>, vector<8x256xf32>,
    %c0_6 = arith.constant 0 : index
    %c0_7 = arith.constant 0 : index
    %105 = vector.load %arg6[%c0_6, %c0_7] : memref<8x256xf32, #tpu.memory_space<vmem>>, vector<8x256xf32>
    %c0_8 = arith.constant 0 : index
    %c0_9 = arith.constant 0 : index
    %106 = vector.load %arg4[%c0_8, %c0_9] : memref<8x1xf32, #tpu.memory_space<vmem>>, vector<8x1xf32>
    %107 = vector.broadcast %106 : vector<8x1xf32> to vector<8x256xf32>
    %108 = arith.addf %105, %107 : vector<8x256xf32>
    %cst_10 = arith.constant 5.000000e-01 : f32
    %109 = vector.broadcast %cst_10 : f32 to vector<8x256xf32>
    %110 = arith.mulf %109, %108 : vector<8x256xf32>
    %111 = math.tanh %110 : vector<8x256xf32>
    %cst_11 = arith.constant 1.000000e+00 : f32
    %112 = vector.broadcast %cst_11 : f32 to vector<8x256xf32>
    %113 = arith.addf %111, %112 : vector<8x256xf32>
    %cst_12 = arith.constant 5.000000e-01 : f32
    %114 = vector.broadcast %cst_12 : f32 to vector<8x256xf32>
    %115 = arith.mulf %114, %113 : vector<8x256xf32>
    %116 = arith.mulf %108, %115 : vector<8x256xf32>
    %c0_13 = arith.constant 0 : index
    %c0_14 = arith.constant 0 : index
    %c0_15 = arith.constant 0 : index
    %117 = vector.load %arg5[%c0_13, %c0_14, %c0_15] : memref<1x8x256xf32, #tpu.memory_space<vmem>>, vector<1x8x256xf32>
    %118 = vector.shape_cast %117 : vector<1x8x256xf32> to vector<8x256xf32>
    %119 = vector.shape_cast %116 : vector<8x256xf32> to vector<1x8x256xf32>
    tpu.vector_store %arg5[%c0_13, %c0_14, %c0_15], %119 {strides = array<i32>} : memref<1x8x256xf32, #tpu.memory_space<vmem>>, vector<1x8x256xf32>,
    return
  }
  func.func @transform_0(%arg0: i32, %arg1: i32) -> (i32, i32, i32) {
    %c0_i32 = arith.constant 0 : i32
    %c0_i32_0 = arith.constant 0 : i32
    %c0_i32_1 = arith.constant 0 : i32
    return %arg0, %c0_i32, %c0_i32_0 : i32, i32, i32
  }
  func.func @transform_1(%arg0: i32, %arg1: i32) -> (i32, i32) {
    %c0_i32 = arith.constant 0 : i32
    %c0_i32_0 = arith.constant 0 : i32
    %c0_i32_1 = arith.constant 0 : i32
    return %c0_i32, %c0_i32_0 : i32, i32
  }
  func.func @transform_2(%arg0: i32, %arg1: i32) -> (i32, i32) {
    %c0_i32 = arith.constant 0 : i32
    %c0_i32_0 = arith.constant 0 : i32
    %c0_i32_1 = arith.constant 0 : i32
    return %c0_i32, %c0_i32_0 : i32, i32
  }
  func.func @transform_3(%arg0: i32, %arg1: i32) -> (i32, i32, i32) {
    %c0_i32 = arith.constant 0 : i32
    %c0_i32_0 = arith.constant 0 : i32
    return %arg0, %c0_i32, %arg1 : i32, i32, i32
  }
}

</mosaic_0001>

<bundles_post_ra>
// kernel: conv_bn_silu.1
= control target key start
LH: loop header
LB: loop body
LE: loop exit
PB: predicated region body
PF: predicated region fallthrough
CT: control target
= control target key end

     0   :  { %8 = vsyncpa [#allocation4], 0  ;;  %s2529_s0 = inlined_call_operand.hbm [shape: f32[2,72,18], index: 0, kind: input, shape index: {}]   ;;  %s2530_s1 = inlined_call_operand.hbm [shape: f32[8,36], index: 1, kind: input, shape index: {}]   ;;  %s2531_s2 = inlined_call_operand.hbm [shape: f32[8,1], index: 2, kind: input, shape index: {}]   ;;  %s2532_s3 = inlined_call_operand.hbm [shape: f32[2,8,256], index: 3, kind: output, shape index: {}]  }
   0x1   :  { %10 = vsyncpa [#allocation4 + $0x1], 0 }
   0x2   :  { %11 = vsyncpa [#allocation7], 0 }
   0x3   :  { %12 = vsyncpa [#allocation5], 0 }
   0x4   :  { %14 = vsyncpa [#allocation5 + $0x1], 0  ;;  %s1787_s12 = smov 0   ;;  %s1789_s13 = smov 0  }
   0x5   :  { %s1791_s14 = smov 0   ;;  %s1793_s15 = smov 0  }
   0x6   :  { %s1795_s16 = smov 0   ;;  %s1797_s17 = smov 0  }
   0x7 LB: > { %s1369_s18 = sadd.s32 4294967295, %s1734_s17   ;;  %s1370_s19 = sadd.s32 4294967294, %s1734_s17   ;;  %s1734_s17 = sphi %s1797_s17, %s20_s17   ;;  %s1730_s16 = sphi %s1795_s16, %s2558_s16   ;;  %s1726_s15 = sphi %s1793_s15, %s2557_s15   ;;  %s1722_s14 = sphi %s1791_s14, %s2556_s14   ;;  %s1718_s13 = sphi %s1789_s13, %s2555_s13   ;;  %s1714_s12 = sphi %s1787_s12, %s2554_s12  }
   0x8   : > { %s39_s20 = sadd.s32 1, %s1722_s14  ;;  %p46_p0 = scmp.ne.s32.totalorder %s1722_s14, %s1718_s13 }
   0x9   : > { %p47_p1 = scmp.eq.s32.totalorder %s1734_s17, 0  ;;  %p52_p2 = scmp.ne.s32.totalorder %s1718_s13, %s1714_s12 }
   0xa   : > { %p1825_p3 = scmp.eq.s32.totalorder %s1369_s18, 0  ;;  %p120_p4 = scmp.eq.s32.totalorder %s1369_s18, 1 }
   0xb   : > { %p1829_p5 = por %p47_p1, %p46_p0  ;;  %p126_p6 = scmp.eq.s32.totalorder %s1370_s19, 1 }
   0xc   : > { %s2539_s21 = scalar_select %p1825_p3, 1, 0 }
   0xd   : > { %p1835_p7 = por %p1825_p3, %p52_p2  ;;  %p1839_p8 = por %p120_p4, %p46_p0 }
   0xe   : > { %p1843_p9 = por %p126_p6, %p52_p2  ;;  %p1371_p10 = scmp.ge.s32.totalorder %s1734_s17, 1 }
   0xf   : > { %s2541_s23 = scalar_select %p1835_p7, 1, 0 }
  0x10   : > { %s2542_s24 = scalar_select %p1839_p8, 1, 0 }
  0x11   : > { %s2543_s25 = scalar_select %p1843_p9, 1, 0 }
  0x12   : > { %p133_p11 = scmp.lt.s32.totalorder %s1734_s17, 3  ;;  %s1736_s27 = smov [#allocation6]  }
  0x13   : > { %s146_s28 = sshll.u32 %s1736_s27, 4  ;;  %p1476_p1 = scmp.lt.s32.totalorder %s1734_s17, 2  ;;  %s147_s28 = int_to_ptr.vmem [resolvable:$true] %s146_s28 }
  0x14   : > { %p1850_p13 = pnand %p1371_p10, %p133_p11  ;;  %s1737_s30 = smov [#allocation8]  }
  0x15   : > { %p1859_p4 = pnand %p1476_p1, %p1829_p5  ;;  %s157_s4 = sshll.u32 %s1737_s30, 4  ;;  %s1869_s4 = int_to_ptr.vmem [resolvable:$true] %s157_s4 }
  0x16   : > { %s2544_s26 = scalar_select %p1850_p13, 1, 0 }
  0x17   : > { %p1459_p0 = pneg %p1850_p13  ;;  %s1562_s8 = scalar_lea.hbm %s2530_s1, 128 }
  0x18   : > { %s2545_s29 = scalar_select %p1859_p4, 1, 0 }
  0x19   : > { %p1865_p2 = pnand %p1459_p0, %p1825_p3  ;;  %p1563_p5 = scmp.ne.s32.totalorder %s2530_s1, %s1562_s8 }
  0x1a   : > { %p1569_p1 = scmp.lt.u32.totalorder %s1562_s8, %s2530_s1 }
  0x1b   : > { %p1564_p6 = pneg %p1865_p2 }
  0x1d   : > { %p1565_p10 = pnand %p1564_p6, %p1563_p5 }
  0x1f   : > { %p1566_p11 = pneg %p1565_p10 }
  0x21   : > { %p1571_p0 = pnand %p1569_p1, %p1566_p11 }
  0x23   : > { %1574 = shalt.err (!%p1571_p0)
}
  0x24   : > { %s1575_s19 = scalar_lea.vmem %s147_s28, 128  ;;  %p1583_p3 = scmp.lt.s32.totalorder %s147_s28, %s147_s28 }
  0x25   : > { %p1576_p12 = scmp.ne.s32.totalorder %s147_s28, %s1575_s19  ;;  %p1584_p7 = scmp.lt.s32.totalorder %s1575_s19, %s1575_s19 }
  0x27   : > { %p1578_p9 = pnand %p1576_p12, %p1564_p6  ;;  %p1585_p13 = por %p1584_p7, %p1583_p3 }
  0x29   : > { %p1579_p8 = pneg %p1578_p9 }
  0x2b   : > { %p1586_p4 = pnand %p1585_p13, %p1579_p8 }
  0x2d   : > { %1589 = shalt.err (!%p1586_p4)
}
  0x2e   : > { %1462 = dma.hbm_to_vmem [thread:$0]  (!%p1865_p2), %s2530_s1, 128, %s147_s28, [#allocation7]  }
  0x2f   : > { %s1590_s7 = scalar_lea.hbm %s2531_s2, 128 }
  0x30   : > { %p1591_p9 = scmp.ne.s32.totalorder %s2531_s2, %s1590_s7  ;;  %p1597_p8 = scmp.lt.u32.totalorder %s1590_s7, %s2531_s2 }
  0x32   : > { %p1593_p3 = pnand %p1591_p9, %p1564_p6 }
  0x34   : > { %p1594_p7 = pneg %p1593_p3 }
  0x36   : > { %p1599_p12 = pnand %p1597_p8, %p1594_p7 }
  0x38   : > { %1602 = shalt.err (!%p1599_p12)
}
  0x39   : > { %s1603_s28 = scalar_lea.vmem %s1869_s4, 128  ;;  %p1611_p10 = scmp.lt.s32.totalorder %s1869_s4, %s1869_s4 }
  0x3a   : > { %p1604_p13 = scmp.ne.s32.totalorder %s1869_s4, %s1603_s28  ;;  %p1612_p11 = scmp.lt.s32.totalorder %s1603_s28, %s1603_s28 }
  0x3c   : > { %p1606_p4 = pnand %p1604_p13, %p1564_p6  ;;  %p1613_p1 = por %p1612_p11, %p1611_p10 }
  0x3e   : > { %p1607_p5 = pneg %p1606_p4 }
  0x40   : > { %p1614_p0 = pnand %p1613_p1, %p1607_p5 }
  0x42   : > { %1617 = shalt.err (!%p1614_p0)
}
  0x43   : > { %1465 = dma.hbm_to_vmem [thread:$0]  (!%p1865_p2), %s2531_s2, 128, %s1869_s4, [#allocation7]  }
  0x44   : > { %s32_s22 = sadd.s32 1, %s1730_s16  ;;  %s168_s27 = sand.u32 1, %s1722_s14  }
  0x45   : > { %p34_p6 = scmp.ge.s32.totalorder %s32_s22, 2  ;;  %s1444_s30 = smul.u32 72, %s168_s27 }
  0x46   : > { %s1445_s5 = smul.u32 1152, %s1730_s16  ;;  %s1937_s28 = scalar_lea.sflag [#allocation4], %s168_s27 }
  0x47   : > { %s2560_s22 = smov (%p34_p6, %s32_s22), 0  ;;  %s172_s7 = scalar_lea.vmem [#allocation3], %s1444_s30 }
  0x48   : > { %s36_s6 = ssub.s32 %s1730_s16, %s2560_s22  ;;  %s179_s8 = sshll.u32 %s172_s7, 4  ;;  %s1930_s8 = int_to_ptr.vmem [resolvable:$true] %s179_s8 }
  0x49   : > { %p37_p9 = scmp.eq.s32.totalorder %s36_s6, 0  ;;  %s1928_s11 = scalar_lea.hbm %s2529_s0, %s1445_s5 }
  0x4a   : > { %s1618_s18 = scalar_lea.hbm %s1928_s11, 1152  ;;  %p2547_p3 = scmp.ne.s32.totalorder %s2545_s29, 0 }
  0x4b   : > { %s1935_s4 = scalar_select %p37_p9, %s1722_s14, %s39_s20  }
  0x4c   : > { %p1619_p2 = scmp.ne.s32.totalorder %s1928_s11, %s1618_s18  ;;  %p1620_p7 = pneg %p2547_p3 }
  0x4d   : > { %s1623_s5 = scalar_lea.hbm %s2529_s0, 2304  ;;  %p1624_p13 = scmp.lt.u32.totalorder %s1928_s11, %s2529_s0 }
  0x4e   : > { %p1621_p8 = pnand %p1620_p7, %p1619_p2  ;;  %p1625_p4 = scmp.lt.u32.totalorder %s1623_s5, %s1618_s18 }
  0x4f   : > { %p1627_p10 = scmp.lt.u32.totalorder %s1618_s18, %s1928_s11 }
  0x50   : > { %p1622_p12 = pneg %p1621_p8  ;;  %p1626_p5 = por %p1625_p4, %p1624_p13 }
  0x52   : > { %p1628_p11 = por %p1627_p10, %p1626_p5 }
  0x54   : > { %p1629_p1 = pnand %p1628_p11, %p1622_p12 }
  0x56   : > { %1632 = shalt.err (!%p1629_p1)
}
  0x57   : > { %s1633_s20 = scalar_lea.vmem %s1930_s8, 1152  ;;  %s1738_s27 = smov [#allocation3]  }
  0x58   : > { %p1634_p0 = scmp.ne.s32.totalorder %s1930_s8, %s1633_s20  ;;  %s1638_s9 = sshll.u32 %s1738_s27, 4  ;;  %s1639_s9 = int_to_ptr.vmem [resolvable:$false] %s1638_s9 }
  0x59   : > { %s1640_s10 = scalar_lea.vmem %s1639_s9, 2304  ;;  %p1641_p2 = scmp.lt.s32.totalorder %s1930_s8, %s1639_s9 }
  0x5a   : > { %p1636_p6 = pnand %p1634_p0, %p1620_p7  ;;  %p1642_p8 = scmp.lt.s32.totalorder %s1640_s10, %s1633_s20 }
  0x5c   : > { %p1637_p9 = pneg %p1636_p6  ;;  %p1643_p13 = por %p1642_p8, %p1641_p2 }
  0x5e   : > { %p1644_p4 = pnand %p1643_p13, %p1637_p9 }
  0x60   : > { %1647 = shalt.err (!%p1644_p4)
}
  0x61   : > { %s1739_s18 = smov 128   ;;  %s1740_s19 = smov 8  }
  0x62   : > { %1469 = dma.hbm_to_vmem [thread:$0]  (!%p2547_p3), %s1928_s11, 1152, %s1930_s8, %s1937_s28, %s1739_s18, %s1739_s18, %s1740_s19  }
  0x63   : > { %p2548_p7 = scmp.ne.s32.totalorder %s2544_s26, 0 }
  0x64   : > { %s1968_s30 = sand.u32 (!%p2548_p7), 1, %s1718_s13   ;;  %p2549_p12 = scmp.ne.s32.totalorder (!%p2548_p7), %s2541_s23, 0 }
  0x65   : > { %191 = sbr.rel (%p2548_p7) target bundleno = 686 (0x2ae), region = 32  ;;  %s194_s6 = scalar_lea.sflag (!%p2548_p7), [#allocation4], %s1968_s30 }
  0x66   : > { %s1446_s5 = smul.u32 (!%p2548_p7), 72, %s1968_s30 }
  0x68   : > { %s1972_s7 = scalar_lea.vmem (!%p2548_p7), [#allocation3], %s1446_s5 }
  0x6c   : > { %1701 = dma.done.wait (%p2549_p12), %s194_s6, 1152  }
  0x6d   : > { %1703 = vsyncadd (%p2549_p12), %s194_s6, 4294966144  ;;  %p2550_p3 = scmp.ne.s32.totalorder %s2539_s21, 0 }
  0x6f   : > { %1705 = dma.done.wait (%p2550_p3), [#allocation7], 256  }
  0x70   : > { %1707 = vsyncadd (%p2550_p3), [#allocation7], 4294967040  ;;  %v1983_v0 = vld [vmem:[%s1972_s7 + $0x20] sm:$0xff]  ;;  %v1989_v2 = vld [vmem:[%s1972_s7 + $0x28] sm:$0xff]  ;;  %s1741_s26 = smov 127   ;;  %vm241_vm0 = vcmask 1043456  }
  0x71   : > { %v1986_v1 = vld [vmem:[%s1972_s7] sm:$0xff]  ;;  %433 = vrot.lane.b32.xlu0 %v1983_v0, %s1741_s26  ;;  %v1996_v3 = vrot.slane %v1989_v2, 4  ;;  %v1999_v4 = vld [vmem:[%s1972_s7 + $0x8] sm:$0xff]  ;;  %v2002_v5 = vrot.slane %v1983_v0, 4  ;;  %v2009_v8 = vld [vmem:[%s1972_s7 + $0x30] sm:$0xff]  ;;  %s1742_s21 = smov 31  }
  0x72   : > { %385 = vrot.lane.b32.xlu1 %v1986_v1, %s1741_s26  ;;  %v242_v6 = vrot.slane %v1986_v1, 4  ;;  %v2006_v7 = vrot.slane %v1999_v4, 4  ;;  %s1743_s23 = smov 16   ;;  %v2024_v11 = vrot.slane %v2009_v8, 4  ;;  %s1744_s29 = smov 15   ;;  %v2036_v13 = vld [vmem:[%s1972_s7 + $0x10] sm:$0xff] }
  0x73   : > { %v2017_v9 = vsel %vm241_vm0, %v2002_v5, %v1996_v3  ;;  %s1745_s8 = smov 47   ;;  %v2043_v14 = vrot.slane %v2036_v13, 4  ;;  %s1746_s11 = smov 32   ;;  %v2061_v16 = vld [vmem:[%s1972_s7 + $0x38] sm:$0xff]  ;;  %v2108_v22 = vld [vmem:[%s1972_s7 + $0x40] sm:$0xff]  ;;  %vm353_vm1 = vcmask 261120  }
  0x74   : > { %v2021_v10 = vsel %vm241_vm0, %v242_v6, %v2006_v7  ;;  %v2033_v12 = vsel %vm241_vm0, %v1996_v3, %v2024_v11  ;;  %s1747_s28 = smov 63   ;;  %s1748_s20 = smov 48   ;;  %v2067_v17 = vrot.slane %v2061_v16, 4  ;;  %v2082_v19 = vld [vmem:[%s1972_s7 + $0x18] sm:$0xff]  ;;  %v2113_v23 = vrot.slane %v2108_v22, 4 }
  0x75   : > { %445 = vrot.lane.b32.xlu0 %v1989_v2, %s1742_s21  ;;  %v2050_v15 = vsel %vm241_vm0, %v2006_v7, %v2043_v14  ;;  %s1749_s27 = smov 79   ;;  %v2087_v20 = vrot.slane %v2082_v19, 4  ;;  %s1750_s9 = smov 64   ;;  %vm350_vm2 = vcmask 130048   ;;  %vm356_vm3 = vcmask 392192  }
  0x76   : > { %301 = vrot.lane.b32.xlu1 %v1996_v3, %s1743_s23  ;;  %v2076_v18 = vsel %vm241_vm0, %v2024_v11, %v2067_v17  ;;  %s1751_s10 = smov 95   ;;  %s1752_s18 = smov 80   ;;  %v2122_v24 = vsel %vm241_vm0, %v2067_v17, %v2113_v23  ;;  %vm359_vm4 = vcmask 523264   ;;  %vm362_vm5 = vcmask 654336  }
  0x77   : > { %v2095_v21 = vsel %vm241_vm0, %v2043_v14, %v2087_v20  ;;  %s1753_s19 = smov 111   ;;  %s1754_s5 = smov 96   ;;  %v2135_v25 = vsel %vm241_vm0, %v2087_v20, %v2002_v5  ;;  %vm365_vm6 = vcmask 785408   ;;  %vm368_vm7 = vcmask 916480  }
  0x78   : > { %s1755_s6 = smov 126   ;;  %s1756_s7 = smov 14   ;;  %vm649_vm8 = vcmask 293888  }
  0x79   : > { %439 = vrot.lane.b32.xlu0 %v2017_v9, %s1744_s29  ;;  %p2551_p10 = scmp.ne.s32.totalorder %s2542_s24, 0 }
  0x7a   : > { %391 = vrot.lane.b32.xlu1 %v2021_v10, %s1744_s29 }
  0x7d   : > { %397 = vrot.lane.b32.xlu0 %v1999_v4, %s1742_s21 }
  0x7e   : > { %451 = vrot.lane.b32.xlu1 %v2033_v12, %s1745_s8 }
  0x81   : > { %247 = vrot.lane.b32.xlu0 %v2006_v7, %s1743_s23 }
  0x82   : > { %299 = vrot.lane.b32.xlu1 %v2017_v9, %s1743_s23 }
  0x85   : > { %308 = vrot.lane.b32.xlu0 %v2009_v8, %s1746_s11 }
  0x86   : > { %403 = vrot.lane.b32.xlu1 %v2050_v15, %s1745_s8 }
  0x89   : > { %457 = vrot.lane.b32.xlu0 %v2009_v8, %s1747_s28 }
  0x8a   : > { %245 = vrot.lane.b32.xlu1 %v2021_v10, %s1743_s23  ;;  %s1759_s23 = smov 46  }
  0x8d   : > { %254 = vrot.lane.b32.xlu0 %v2036_v13, %s1746_s11 }
  0x8e   : > { %306 = vrot.lane.b32.xlu1 %v1989_v2, %s1746_s11 }
  0x91   : > { %316 = vrot.lane.b32.xlu0 %v2024_v11, %s1748_s20 }
  0x92   : > { %409 = vrot.lane.b32.xlu1 %v2036_v13, %s1747_s28 }
  0x95   : > { %435 = vrot.lane.b32.xlu0 %v1989_v2, %s1741_s26 }
  0x96   : > { %441 = vrot.lane.b32.xlu1 %v1996_v3, %s1744_s29 }
  0x99   : > { %463 = vrot.lane.b32.xlu0 %v2076_v18, %s1749_s27 }
  0x9a   : > { %252 = vrot.lane.b32.xlu1 %v1999_v4, %s1746_s11  ;;  %s1762_s11 = smov 94  }
  0x9d   : > { %262 = vrot.lane.b32.xlu0 %v2043_v14, %s1748_s20 }
  0x9e   : > { %314 = vrot.lane.b32.xlu1 %v2033_v12, %s1748_s20 }
  0xa1   : > { %323 = vrot.lane.b32.xlu0 %v2061_v16, %s1750_s9 }
  0xa2   : > { %387 = vrot.lane.b32.xlu1 %v1999_v4, %s1741_s26  ;;  %s1757_s26 = smov 112  }
  0xa5   : > { %393 = vrot.lane.b32.xlu0 %v2006_v7, %s1744_s29  ;;  %s1760_s29 = smov 62  }
  0xa6   : > { %415 = vrot.lane.b32.xlu1 %v2095_v21, %s1749_s27 }
  0xa9   : > { %447 = vrot.lane.b32.xlu0 %v2009_v8, %s1742_s21 }
  0xaa   : > { %469 = vrot.lane.b32.xlu1 %v2061_v16, %s1751_s10 }
  0xad   : > { %260 = vrot.lane.b32.xlu0 %v2050_v15, %s1748_s20  ;;  %s1379_s20 = sshll.u32 %s1968_s30, 4 }
  0xae   : > { %269 = vrot.lane.b32.xlu1 %v2082_v19, %s1750_s9 }
  0xb1   : > { %321 = vrot.lane.b32.xlu0 %v2009_v8, %s1750_s9 }
  0xb2   : > { %331 = vrot.lane.b32.xlu1 %v2067_v17, %s1752_s18 }
  0xb5   : > { %399 = vrot.lane.b32.xlu0 %v2036_v13, %s1742_s21  ;;  %s1758_s21 = smov 30  }
  0xb6   : > { %421 = vrot.lane.b32.xlu1 %v2082_v19, %s1751_s10 }
  0xb9   : > { %453 = vrot.lane.b32.xlu0 %v2024_v11, %s1745_s8 }
  0xba   : > { %475 = vrot.lane.b32.xlu1 %v2122_v24, %s1753_s19 }
  0xbd   : > { %267 = vrot.lane.b32.xlu0 %v2036_v13, %s1750_s9  ;;  %s227_s9 = scalar_lea.vmem [#allocation9], %s1379_s20 }
  0xbe   : > { %277 = vrot.lane.b32.xlu1 %v2087_v20, %s1752_s18 }
  0xc1   : > { %329 = vrot.lane.b32.xlu0 %v2076_v18, %s1752_s18 }
  0xc2   : > { %338 = vrot.lane.b32.xlu1 %v2108_v22, %s1754_s5 }
  0xc5   : > { %405 = vrot.lane.b32.xlu0 %v2043_v14, %s1745_s8  ;;  %s1761_s8 = smov 78  }
  0xc6   : > { %427 = vrot.lane.b32.xlu1 %v2135_v25, %s1753_s19 }
  0xc9   : > { %459 = vrot.lane.b32.xlu0 %v2061_v16, %s1747_s28 }
  0xca   : > { %557 = vrot.lane.b32.xlu1 %v1983_v0, %s1755_s6 }
  0xcd   : > { %563 = vrot.lane.b32.xlu0 %v2017_v9, %s1756_s7 }
  0xce   : > { %275 = vrot.lane.b32.xlu1 %v2095_v21, %s1752_s18 }
  0xd1   : > { %284 = vrot.lane.b32.xlu0 %v1983_v0, %s1754_s5 }
  0xd2   : > { %336 = vrot.lane.b32.xlu1 %v2061_v16, %s1754_s5 }
  0xd5   : > { %346 = vrot.lane.b32.xlu0 %v2113_v23, %s1757_s26 }
  0xd6   : > { %411 = vrot.lane.b32.xlu1 %v2082_v19, %s1747_s28  ;;  %s1763_s28 = smov 110  }
  0xd9   : > { %465 = vrot.lane.b32.xlu0 %v2067_v17, %s1749_s27 }
  0xda   : > { %509 = vrot.lane.b32.xlu1 %v1986_v1, %s1755_s6 }
  0xdd   : > { %515 = vrot.lane.b32.xlu0 %v2021_v10, %s1756_s7 }
  0xde   : > { %569 = vrot.lane.b32.xlu1 %v1989_v2, %s1758_s21 }
  0xe1   : > { %282 = vrot.lane.b32.xlu0 %v2082_v19, %s1754_s5 }
  0xe2   : > { %292 = vrot.lane.b32.xlu1 %v2002_v5, %s1757_s26 }
  0xe3   : > { %v434_v26 = vpop.permute.xlu0 %433 }
  0xe4   : > { %v386_v27 = vpop.permute.xlu1 %385 }
  0xe5   : > { %344 = vrot.lane.b32.xlu0 %v2122_v24, %s1757_s26 }
  0xe6   : > { %417 = vrot.lane.b32.xlu1 %v2087_v20, %s1749_s27  ;;  %s1385_s27 = sshll.u32 %s1726_s15, 8  ;;  %s1766_s15 = smov [#allocation9]  }
  0xe7   : > { %v446_v28 = vpop.permute.xlu0 %445  ;;  %s2480_s5 = scalar_lea.hbm %s2532_s3, %s1385_s27 }
  0xe8   : > { %v302_v29 = vpop.permute.xlu1 %301 }
  0xe9   : > { %471 = vrot.lane.b32.xlu0 %v2108_v22, %s1751_s10  ;;  %v372_v41 = vsel %vm350_vm2, %v1989_v2, %v302_v29 }
  0xea   : > { %521 = vrot.lane.b32.xlu1 %v1999_v4, %s1758_s21 }
  0xeb   : > { %v440_v30 = vpop.permute.xlu0 %439 }
  0xec   : > { %v392_v31 = vpop.permute.xlu1 %391  ;;  %v495_v32 = vsel %vm350_vm2, %v434_v26, %v440_v30 }
  0xed   : > { %v481_v33 = vsel %vm350_vm2, %v386_v27, %v392_v31  ;;  %575 = vrot.lane.b32.xlu0 %v2033_v12, %s1759_s23  ;;  %v497_v34 = vsel %vm353_vm1, %v495_v32, %v446_v28 }
  0xee   : > { %290 = vrot.lane.b32.xlu1 %v2135_v25, %s1757_s26  ;;  %s1652_s26 = sshll.u32 %s1766_s15, 4  ;;  %s1653_s26 = int_to_ptr.vmem [resolvable:$false] %s1652_s26 }
  0xef   : > { %v398_v35 = vpop.permute.xlu0 %397 }
  0xf0   : > { %v452_v36 = vpop.permute.xlu1 %451  ;;  %v483_v37 = vsel %vm353_vm1, %v481_v33, %v398_v35  ;;  %v1765_v35 = vmov 0  }
  0xf1   : > { %v499_v38 = vsel %vm356_vm3, %v497_v34, %v452_v36  ;;  %423 = vrot.lane.b32.xlu0 %v1983_v0, %s1751_s10  ;;  %v1232_v34 = vld [vmem:[#allocation8] sm:$0xff]  ;;  %s1269_s10 = sshll.u32 %s227_s9, 4  ;;  %s2482_s10 = int_to_ptr.vmem [resolvable:$true] %s1269_s10 }
  0xf2   : > { %477 = vrot.lane.b32.xlu1 %v2113_v23, %s1753_s19  ;;  %1557 = vset.pattern.permute.xlu0 %v1765_v35  ;;  %p1655_p0 = scmp.lt.s32.totalorder %s2482_s10, %s1653_s26 }
  0xf3   : > { %v248_v39 = vpop.permute.xlu0 %247 }
  0xf4   : > { %v300_v40 = vpop.permute.xlu1 %299  ;;  %v352_v49 = vsel %vm350_vm2, %v1999_v4, %v248_v39 }
  0xf5   : > { %527 = vrot.lane.b32.xlu0 %v2050_v15, %s1759_s23  ;;  %v371_v50 = vsel %vm350_vm2, %v1983_v0, %v300_v40 }
  0xf6   : > { %581 = vrot.lane.b32.xlu1 %v2009_v8, %s1760_s29 }
  0xf7   : > { %v309_v42 = vpop.permute.xlu0 %308 }
  0xf8   : > { %v404_v43 = vpop.permute.xlu1 %403  ;;  %v374_v44 = vsel %vm353_vm1, %v372_v41, %v309_v42 }
  0xf9   : > { %v485_v45 = vsel %vm356_vm3, %v483_v37, %v404_v43  ;;  %429 = vrot.lane.b32.xlu0 %v2002_v5, %s1753_s19 }
  0xfa   : > { %533 = vrot.lane.b32.xlu1 %v2036_v13, %s1760_s29 }
  0xfb   : > { %v458_v46 = vpop.permute.xlu0 %457 }
  0xfc   : > { %v246_v47 = vpop.permute.xlu1 %245  ;;  %v501_v48 = vsel %vm359_vm4, %v499_v38, %v458_v46 }
  0xfd   : > { %587 = vrot.lane.b32.xlu0 %v2076_v18, %s1761_s8  ;;  %v351_v62 = vsel %vm350_vm2, %v1986_v1, %v246_v47 }
  0xfe   : > { %539 = vrot.lane.b32.xlu1 %v2095_v21, %s1761_s8 }
  0xff   : > { %v255_v51 = vpop.permute.xlu0 %254 }
 0x100   : > { %v307_v52 = vpop.permute.xlu1 %306  ;;  %v355_v53 = vsel %vm353_vm1, %v352_v49, %v255_v51 }
 0x101   : > { %v373_v54 = vsel %vm353_vm1, %v371_v50, %v307_v52  ;;  %559 = vrot.lane.b32.xlu0 %v1989_v2, %s1755_s6 }
 0x102   : > { %565 = vrot.lane.b32.xlu1 %v1996_v3, %s1756_s7 }
 0x103   : > { %v317_v55 = vpop.permute.xlu0 %316 }
 0x104   : > { %v410_v56 = vpop.permute.xlu1 %409  ;;  %v376_v57 = vsel %vm356_vm3, %v374_v44, %v317_v55 }
 0x105   : > { %v487_v58 = vsel %vm359_vm4, %v485_v45, %v410_v56  ;;  %593 = vrot.lane.b32.xlu0 %v2061_v16, %s1762_s11 }
 0x106   : > { %511 = vrot.lane.b32.xlu1 %v1999_v4, %s1755_s6  ;;  %s1253_s6 = scalar_lea.sflag [#allocation5], %s1968_s30 }
 0x107   : > { %v436_v59 = vpop.permute.xlu0 %435 }
 0x108   : > { %v442_v60 = vpop.permute.xlu1 %441 }
 0x109   : > { %v496_v61 = vsel %vm350_vm2, %v436_v59, %v442_v60  ;;  %517 = vrot.lane.b32.xlu0 %v2006_v7, %s1756_s7  ;;  %s1648_s7 = scalar_lea.vmem %s2482_s10, 256 }
 0x10a   : > { %545 = vrot.lane.b32.xlu1 %v2082_v19, %s1762_s11  ;;  %p1649_p5 = scmp.ne.s32.totalorder %s2482_s10, %s1648_s7 }
 0x10b   : > { %v464_v63 = vpop.permute.xlu0 %463 }
 0x10c   : > { %v253_v2 = vpop.permute.xlu1 %252  ;;  %v503_v3 = vsel %vm362_vm5, %v501_v48, %v464_v63  ;;  %p1650_p11 = pnand %p1649_p5, %p2551_p10 }
 0x10d   : > { %v2224_v4 = vsel %vm353_vm1, %v351_v62, %v253_v2  ;;  %571 = vrot.lane.b32.xlu0 %v2009_v8, %s1758_s21 }
 0x10e   : > { %599 = vrot.lane.b32.xlu1 %v2122_v24, %s1763_s28  ;;  %p1651_p1 = pneg %p1650_p11 }
 0x10f   : > { %v263_v6 = vpop.permute.xlu0 %262 }
 0x110   : > { %v315_v7 = vpop.permute.xlu1 %314  ;;  %v2231_v9 = vsel %vm356_vm3, %v355_v53, %v263_v6 }
 0x111   : > { %v2234_v1 = vsel %vm356_vm3, %v373_v54, %v315_v7  ;;  %523 = vrot.lane.b32.xlu0 %v2036_v13, %s1758_s21  ;;  %s1654_s21 = scalar_lea.vmem %s1653_s26, 512 }
 0x112   : > { %551 = vrot.lane.b32.xlu1 %v2135_v25, %s1763_s28  ;;  %p1656_p6 = scmp.lt.s32.totalorder %s1654_s21, %s1648_s7 }
 0x113   : > { %v324_v10 = vpop.permute.xlu0 %323 }
 0x114   : > { %v388_v8 = vpop.permute.xlu1 %387  ;;  %v378_v12 = vsel %vm359_vm4, %v376_v57, %v324_v10  ;;  %p1657_p9 = por %p1656_p6, %p1655_p0 }
 0x115   : > { %577 = vrot.lane.b32.xlu0 %v2024_v11, %s1759_s23  ;;  %v1764_v11 = vmov 0.0  }
 0x116   : > { %529 = vrot.lane.b32.xlu1 %v2043_v14, %s1759_s23  ;;  %733 = vmatprep.mubr.f32.mxu1 %v1764_v11  ;;  %p1658_p2 = pnand %p1657_p9, %p1651_p1 }
 0x117   : > { %v394_v15 = vpop.permute.xlu0 %393  ;;  %1034 = vmatprep.mubr.f32.mxu0 %v1764_v11 }
 0x118   : > { %v416_v18 = vpop.permute.xlu1 %415  ;;  %v482_v21 = vsel %vm350_vm2, %v388_v8, %v394_v15 }
 0x119   : > { %v489_v24 = vsel %vm362_vm5, %v487_v58, %v416_v18  ;;  %583 = vrot.lane.b32.xlu0 %v2061_v16, %s1760_s29 }
 0x11a   : > { %535 = vrot.lane.b32.xlu1 %v2082_v19, %s1760_s29 }
 0x11b   : > { %v448_v13 = vpop.permute.xlu0 %447 }
 0x11c   : > { %v470_v25 = vpop.permute.xlu1 %469  ;;  %v498_v26 = vsel %vm353_vm1, %v496_v61, %v448_v13 }
 0x11d   : > { %589 = vrot.lane.b32.xlu0 %v2067_v17, %s1761_s8  ;;  %v505_v41 = vsel %vm365_vm6, %v503_v3, %v470_v25 }
 0x11e   : > { %541 = vrot.lane.b32.xlu1 %v2087_v20, %s1761_s8 }
 0x11f   : > { %v2258_v14 = vpop.permute.xlu0 %260 }
 0x120   : > { %v270_v16 = vpop.permute.xlu1 %269 }
 0x121   : > { %595 = vrot.lane.b32.xlu0 %v2108_v22, %s1762_s11  ;;  %v361_v58 = vsel %vm359_vm4, %v2231_v9, %v270_v16 }
 0x122   : > { %547 = vrot.lane.b32.xlu1 %v1983_v0, %s1762_s11 }
 0x123   : > { %v322_v19 = vpop.permute.xlu0 %321 }
 0x124   : > { %v332_v27 = vpop.permute.xlu1 %331  ;;  %v377_v6 = vsel %vm359_vm4, %v2234_v1, %v322_v19  ;;  %v357_v1 = vsel %vm356_vm3, %v2224_v4, %v2258_v14 }
 0x125   : > { %601 = vrot.lane.b32.xlu0 %v2113_v23, %s1763_s28  ;;  %v380_v45 = vsel %vm362_vm5, %v378_v12, %v332_v27 }
 0x126   : > { %553 = vrot.lane.b32.xlu1 %v2002_v5, %s1763_s28 }
 0x127   : > { %v400_v17 = vpop.permute.xlu0 %399 }
 0x128   : > { %v422_v20 = vpop.permute.xlu1 %421  ;;  %v484_v28 = vsel %vm353_vm1, %v482_v21, %v400_v17 }
 0x129   : > { %1235 = vperm.xlu0 %1557, %v1232_v34   ;;  %v491_v54 = vsel %vm365_vm6, %v489_v24, %v422_v20 }
 0x12b   : > { %v454_v29 = vpop.permute.xlu0 %453 }
 0x12c   : > { %v476_v30 = vpop.permute.xlu1 %475  ;;  %v2270_v31 = vsel %vm356_vm3, %v498_v26, %v454_v29 }
 0x12d   : > { %v2281_v44 = vsel %vm368_vm7, %v505_v41, %v476_v30 }
 0x12e   : > { %v638_v46 = vrot.slane %v2281_v44, 4 }
 0x12f   : > { %v268_v22 = vpop.permute.xlu0 %267 }
 0x130   : > { %v278_v32 = vpop.permute.xlu1 %277  ;;  %v360_v27 = vsel %vm359_vm4, %v357_v1, %v268_v22 }
 0x131   : > { %v364_v60 = vsel %vm362_vm5, %v361_v58, %v278_v32 }
 0x133   : > { %v330_v0 = vpop.permute.xlu0 %329 }
 0x134   : > { %v339_v33 = vpop.permute.xlu1 %338  ;;  %v379_v10 = vsel %vm362_vm5, %v377_v6, %v330_v0 }
 0x135   : > { %v382_v47 = vsel %vm365_vm6, %v380_v45, %v339_v33 }
 0x137   : > { %v406_v23 = vpop.permute.xlu0 %405 }
 0x138   : > { %v428_v36 = vpop.permute.xlu1 %427  ;;  %v2273_v5 = vsel %vm356_vm3, %v484_v28, %v406_v23 }
 0x139   : > { %v2300_v57 = vsel %vm368_vm7, %v491_v54, %v428_v36 }
 0x13a   : > { %v637_v61 = vrot.slane %v2300_v57, 4 }
 0x13b   : > { %v460_v37 = vpop.permute.xlu0 %459 }
 0x13c   : > { %v2275_v38 = vpop.permute.xlu1 %557  ;;  %v502_v33 = vsel %vm359_vm4, %v2270_v31, %v460_v37 }
 0x13f   : > { %v2277_v39 = vpop.permute.xlu0 %563 }
 0x140   : > { %v276_v40 = vpop.permute.xlu1 %275 }
 0x141   : > { %v363_v14 = vsel %vm362_vm5, %v360_v27, %v276_v40 }
 0x143   : > { %v285_v42 = vpop.permute.xlu0 %284 }
 0x144   : > { %v337_v43 = vpop.permute.xlu1 %336  ;;  %v367_v62 = vsel %vm365_vm6, %v364_v60, %v285_v42 }
 0x145   : > { %v381_v8 = vsel %vm365_vm6, %v379_v10, %v337_v43 }
 0x147   : > { %v347_v48 = vpop.permute.xlu0 %346 }
 0x148   : > { %v2286_v49 = vpop.permute.xlu1 %411  ;;  %v384_v50 = vsel %vm368_vm7, %v382_v47, %v347_v48 }
 0x149   : > { %v648_v51 = vsel %vm241_vm0, %v384_v50, %v638_v46 }
 0x14a   : > { %v663_v59 = vand.u32 4294901760, %v648_v51 }
 0x14b   : > { %v466_v52 = vpop.permute.xlu0 %465 }
 0x14c   : > { %v2292_v53 = vpop.permute.xlu1 %509  ;;  %v2310_v7 = vsub.f32 %v648_v51, %v663_v59  ;;  %v504_v40 = vsel %vm362_vm5, %v502_v33, %v466_v52 }
 0x14e   : > { %v759_v13 = vand.u32 4294901760, %v2310_v7 }
 0x14f   : > { %v2295_v55 = vpop.permute.xlu0 %515 }
 0x150   : > { %v2297_v56 = vpop.permute.xlu1 %569  ;;  %v760_v28 = vsub.f32 %v2310_v7, %v759_v13 }
 0x152   : > { %v761_v41 = vand.u32 4294901760, %v760_v28 }
 0x153   : > { %v283_v63 = vpop.permute.xlu0 %282 }
 0x154   : > { %v293_v2 = vpop.permute.xlu1 %292  ;;  %v366_v29 = vsel %vm365_vm6, %v363_v14, %v283_v63 }
 0x155   : > { %v370_v3 = vsel %vm368_vm7, %v367_v62, %v293_v2  ;;  %v488_v2 = vsel %vm359_vm4, %v2273_v5, %v2286_v49 }
 0x156   : > { %v647_v9 = vsel %vm241_vm0, %v370_v3, %v637_v61 }
 0x157   : > { %v345_v12 = vpop.permute.xlu0 %344  ;;  %v665_v21 = vand.u32 4294901760, %v647_v9 }
 0x158   : > { %v418_v15 = vpop.permute.xlu1 %417  ;;  %v383_v18 = vsel %vm368_vm7, %v381_v8, %v345_v12 }
 0x159   : > { %v659_v24 = vand.u32 4294901760, %v383_v18  ;;  %v2329_v17 = vsub.f32 %v647_v9, %v665_v21  ;;  %v490_v9 = vsel %vm362_vm5, %v488_v2, %v418_v15  ;;  %v619_v15 = vsel %vm350_vm2, %v2275_v38, %v2277_v39 }
 0x15a   : > { %v621_v27 = vsel %vm353_vm1, %v619_v15, %v2297_v56 }
 0x15b   : > { %v2322_v25 = vsub.f32 %v383_v18, %v659_v24  ;;  %v472_v26 = vpop.permute.xlu0 %471  ;;  %v2326_v19 = vpack.c.bf16 %v663_v59, %v659_v24  ;;  %v765_v35 = vand.u32 4294901760, %v2329_v17 }
 0x15c   : > { %v2324_v16 = vpop.permute.xlu1 %521  ;;  %v506_v42 = vsel %vm365_vm6, %v504_v40, %v472_v26 }
 0x15d   : > { %v747_v20 = vand.u32 4294901760, %v2322_v25  ;;  %1387 = vmatprep.subr.bf16.mxu1 %v2326_v19  ;;  %1411 = vmatprep.subr.bf16.mxu0 %v2326_v19  ;;  %v1402_v4 = vpack.c.bf16 %v2310_v7, %v2322_v25  ;;  %v766_v37 = vsub.f32 %v2329_v17, %v765_v35 }
 0x15f   : > { %v576_v30 = vpop.permute.xlu0 %575  ;;  %v748_v22 = vsub.f32 %v2322_v25, %v747_v20  ;;  %v2340_v0 = vpack.c.bf16 %v759_v13, %v747_v20  ;;  %v767_v6 = vand.u32 4294901760, %v766_v37 }
 0x160   : > { %v291_v32 = vpop.permute.xlu1 %290  ;;  %v623_v14 = vsel %vm356_vm3, %v621_v27, %v576_v30 }
 0x161   : > { %v369_v34 = vsel %vm368_vm7, %v366_v29, %v291_v32  ;;  %v749_v36 = vand.u32 4294901760, %v748_v22 }
 0x162   : > { %v661_v23 = vand.u32 4294901760, %v369_v34 }
 0x163   : > { %v424_v45 = vpop.permute.xlu0 %423  ;;  %v2352_v50 = vpack.c.bf16 %v761_v41, %v749_v36 }
 0x164   : > { %v2348_v43 = vsub.f32 %v369_v34, %v661_v23  ;;  %v478_v47 = vpop.permute.xlu1 %477  ;;  %v2350_v48 = vpack.c.bf16 %v665_v21, %v661_v23  ;;  %v492_v10 = vsel %vm365_vm6, %v490_v9, %v424_v45  ;;  %v229_v45 = vld [vmem:[#allocation6] sm:$0xff] }
 0x165   : > { %v508_v31 = vsel %vm368_vm7, %v506_v42, %v478_v47 }
 0x166   : > { %v753_v51 = vand.u32 4294901760, %v2348_v43  ;;  %v1404_v54 = vpack.c.bf16 %v2329_v17, %v2348_v43  ;;  %v641_v52 = vrot.slane %v508_v31, 4  ;;  %1389 = vmatpush1.bf16.msra.mxu1 %v2350_v48  ;;  %1413 = vmatpush1.bf16.msra.mxu0 %v2350_v48 }
 0x167   : > { %v528_v60 = vpop.permute.xlu0 %527 }
 0x168   : > { %v754_v58 = vsub.f32 %v2348_v43, %v753_v51  ;;  %v2365_v59 = vsel %vm241_vm0, %v638_v46, %v641_v52  ;;  %v582_v62 = vpop.permute.xlu1 %581  ;;  %v2367_v63 = vpack.c.bf16 %v765_v35, %v753_v51  ;;  %v651_v51 = vsel %vm649_vm8, %v229_v45, 0 }
 0x169   : > { %v625_v57 = vsel %vm359_vm4, %v623_v14, %v582_v62  ;;  %v667_v35 = vand.u32 4294901760, %v2365_v59 }
 0x16a   : > { %v755_v3 = vand.u32 4294901760, %v754_v58 }
 0x16b   : > { %v430_v8 = vpop.permute.xlu0 %429  ;;  %v2417_v9 = vsub.f32 %v2365_v59, %v667_v35 }
 0x16c   : > { %v534_v12 = vpop.permute.xlu1 %533  ;;  %v2374_v44 = vpack.c.bf16 %v767_v6, %v755_v3  ;;  %v494_v46 = vsel %vm368_vm7, %v492_v10, %v430_v8 }
 0x16d   : > { %v639_v18 = vrot.slane %v494_v46, 4 }
 0x16f   : > { %v640_v21 = vsel %vm241_vm0, %v637_v61, %v639_v18  ;;  %v588_v24 = vpop.permute.xlu0 %587  ;;  %v605_v61 = vsel %vm350_vm2, %v2292_v53, %v2295_v55 }
 0x170   : > { %v540_v13 = vpop.permute.xlu1 %539  ;;  %v627_v29 = vsel %vm362_vm5, %v625_v57, %v588_v24  ;;  %v607_v32 = vsel %vm353_vm1, %v605_v61, %v2324_v16  ;;  %v669_v42 = vand.u32 4294901760, %v640_v21 }
 0x171   : > { %v609_v56 = vsel %vm356_vm3, %v607_v32, %v528_v60  ;;  %v2409_v60 = vand.u32 4294901760, %v651_v51 }
 0x172   : > { %v611_v30 = vsel %vm359_vm4, %v609_v56, %v534_v12 }
 0x173   : > { %v560_v5 = vpop.permute.xlu0 %559  ;;  %v613_v53 = vsel %vm362_vm5, %v611_v30, %v540_v13  ;;  %v2414_v6 = vsub.f32 %v651_v51, %v2409_v60 }
 0x174   : > { %v566_v49 = vpop.permute.xlu1 %565 }
 0x175   : > { %v620_v10 = vsel %vm350_vm2, %v560_v5, %v566_v49  ;;  %v736_v15 = vand.u32 4294901760, %v2414_v6 }
 0x177   : > { %v594_v1 = vpop.permute.xlu0 %593 }
 0x178   : > { %v512_v26 = vpop.permute.xlu1 %511  ;;  %v629_v38 = vsel %vm365_vm6, %v627_v29, %v594_v1 }
 0x17b   : > { %v518_v20 = vpop.permute.xlu0 %517 }
 0x17c   : > { %v546_v28 = vpop.permute.xlu1 %545  ;;  %v606_v8 = vsel %vm350_vm2, %v512_v26, %v518_v20  ;;  %v771_v26 = vand.u32 4294901760, %v2417_v9 }
 0x17d   : > { %v615_v55 = vsel %vm365_vm6, %v613_v53, %v546_v28  ;;  %v2429_v28 = vsub.f32 %v640_v21, %v669_v42  ;;  %v737_v21 = vsub.f32 %v2414_v6, %v736_v15 }
 0x17f   : > { %v572_v39 = vpop.permute.xlu0 %571 }
 0x180   : > { %v600_v22 = vpop.permute.xlu1 %599  ;;  %v622_v46 = vsel %vm353_vm1, %v620_v10, %v572_v39 }
 0x181   : > { %v631_v33 = vsel %vm368_vm7, %v629_v38, %v600_v22 }
 0x182   : > { %v671_v34 = vand.u32 4294901760, %v631_v33 }
 0x183   : > { %v524_v23 = vpop.permute.xlu0 %523 }
 0x184   : > { %v552_v36 = vpop.permute.xlu1 %551  ;;  %v2400_v16 = vpack.c.bf16 %v671_v34, %v667_v35  ;;  %v2411_v62 = vsub.f32 %v631_v33, %v671_v34  ;;  %v608_v24 = vsel %vm353_vm1, %v606_v8, %v524_v23  ;;  %v777_v33 = vand.u32 4294901760, %v2429_v28 }
 0x185   : > { %v617_v41 = vsel %vm368_vm7, %v615_v55, %v552_v36  ;;  %v772_v35 = vsub.f32 %v2417_v9, %v771_v26  ;;  %v738_v36 = vand.u32 4294901760, %v737_v21 }
 0x186   : > { %v673_v40 = vand.u32 4294901760, %v617_v41  ;;  %1391 = vmatprep.subr.bf16.mxu1 %v2400_v16  ;;  %1415 = vmatprep.subr.bf16.mxu0 %v2400_v16  ;;  %v783_v18 = vand.u32 4294901760, %v2411_v62  ;;  %v778_v45 = vsub.f32 %v2429_v28, %v777_v33 }
 0x187   : > { %v578_v47 = vpop.permute.xlu0 %577 }
 0x188   : > { %v530_v31 = vpop.permute.xlu1 %529  ;;  %v2405_v37 = vpack.c.bf16 %v673_v40, %v669_v42  ;;  %v2421_v12 = vsub.f32 %v617_v41, %v673_v40  ;;  %v624_v27 = vsel %vm356_vm3, %v622_v46, %v578_v47  ;;  %v784_v39 = vsub.f32 %v2411_v62, %v783_v18 }
 0x189   : > { %v610_v59 = vsel %vm356_vm3, %v608_v24, %v530_v31  ;;  %v773_v47 = vand.u32 4294901760, %v772_v35 }
 0x18a   : > { %1393 = vmatpush1.bf16.msra.mxu1 %v2405_v37  ;;  %1417 = vmatpush1.bf16.msra.mxu0 %v2405_v37  ;;  %v789_v20 = vand.u32 4294901760, %v2421_v12  ;;  %v785_v41 = vand.u32 4294901760, %v784_v39  ;;  %v1408_v7 = vpack.c.bf16 %v2421_v12, %v2429_v28 }
 0x18b   : > { %v584_v52 = vpop.permute.xlu0 %583 }
 0x18c   : > { %v536_v58 = vpop.permute.xlu1 %535  ;;  %v626_v5 = vsel %vm359_vm4, %v624_v27, %v584_v52  ;;  %v790_v53 = vsub.f32 %v2421_v12, %v789_v20  ;;  %v1424_v46 = vpack.c.bf16 %v789_v20, %v777_v33 }
 0x18d   : > { %v612_v49 = vsel %vm359_vm4, %v610_v59, %v536_v58  ;;  %v1398_v58 = vpack.c.bf16 %v785_v41, %v773_v47 }
 0x18e   : > { %v791_v31 = vand.u32 4294901760, %v790_v53 }
 0x18f   : > { %v590_v2 = vpop.permute.xlu0 %589 }
 0x190   : > { %v542_v3 = vpop.permute.xlu1 %541  ;;  %v628_v14 = vsel %vm362_vm5, %v626_v5, %v590_v2  ;;  %v1422_v2 = vpack.c.bf16 %v783_v18, %v771_v26 }
 0x191   : > { %v614_v57 = vsel %vm362_vm5, %v612_v49, %v542_v3  ;;  %v779_v3 = vand.u32 4294901760, %v778_v45 }
 0x193   : > { %v596_v13 = vpop.permute.xlu0 %595  ;;  %v1400_v8 = vpack.c.bf16 %v791_v31, %v779_v3 }
 0x194   : > { %v548_v1 = vpop.permute.xlu1 %547  ;;  %v630_v61 = vsel %vm365_vm6, %v628_v14, %v596_v13 }
 0x195   : > { %v616_v29 = vsel %vm365_vm6, %v614_v57, %v548_v1 }
 0x197   : > { %v602_v32 = vpop.permute.xlu0 %601 }
 0x198   : > { %v554_v38 = vpop.permute.xlu1 %553  ;;  %v632_v22 = vsel %vm368_vm7, %v630_v61, %v602_v32 }
 0x199   : > { %v618_v56 = vsel %vm368_vm7, %v616_v29, %v554_v38  ;;  %v657_v30 = vsel %vm241_vm0, %v632_v22, 0 }
 0x19a   : > { %v654_v34 = vsel %vm241_vm0, %v618_v56, 0  ;;  %v675_v55 = vand.u32 4294901760, %v657_v30 }
 0x19b   : > { %v677_v23 = vand.u32 4294901760, %v654_v34 }
 0x19c   : > { %v794_v40 = vsub.f32 %v657_v30, %v675_v55  ;;  %676 = vmatprep.subr.mxu1 %v675_v55  ;;  %977 = vmatprep.subr.mxu0 %v675_v55 }
 0x19d   : > { %v800_v42 = vsub.f32 %v654_v34, %v677_v23  ;;  %678 = vmatpush1.msra.mxu1 %v677_v23  ;;  %979 = vmatpush1.msra.mxu0 %v677_v23 }
 0x19e   : > { %1395 = vmatprep.subr.bf16.mxu1 %v2352_v50  ;;  %1419 = vmatprep.subr.bf16.mxu0 %v2340_v0  ;;  %v795_v52 = vand.u32 4294901760, %v794_v40  ;;  %v1406_v50 = vpack.c.bf16 %v2411_v62, %v2417_v9 }
 0x19f   : > { %v801_v51 = vand.u32 4294901760, %v800_v42  ;;  %739 = vmatmul.mubr.f32.vlgmr.msra.gmra.mrb[0].mxu1 %v738_v36  ;;  %1038 = vmatmul.mubr.f32.vlgmr.msra.gmra.mrb[0].mxu0 %v736_v15 }
 0x1a0   : > { %1397 = vmatpush1.bf16.msra.mxu1 %v2374_v44  ;;  %1421 = vmatpush1.bf16.msra.mxu0 %v2367_v63  ;;  %v796_v10 = vsub.f32 %v794_v40, %v795_v52 }
 0x1a1   : > { %1399 = vmatprep.subr.bf16.mxu1 %v1398_v58  ;;  %1423 = vmatprep.subr.bf16.mxu0 %v1422_v2  ;;  %v802_v13 = vsub.f32 %v800_v42, %v801_v51 }
 0x1a2   : > { %v797_v24 = vand.u32 4294901760, %v796_v10  ;;  %859 = vmatprep.mubr.f32.mxu1 %v1764_v11  ;;  %1138 = vmatprep.mubr.f32.mxu0 %v1764_v11 }
 0x1a3   : > { %v803_v0 = vand.u32 4294901760, %v802_v13 }
 0x1a4   : > { %1401 = vmatpush1.bf16.msra.mxu1 %v1400_v8  ;;  %1425 = vmatpush1.bf16.msra.mxu0 %v1424_v46 }
 0x1a5   : > { %798 = vmatprep.subr.mxu1 %v797_v24  ;;  %1079 = vmatprep.subr.mxu0 %v795_v52 }
 0x1a8   : > { %804 = vmatpush1.msra.mxu1 %v803_v0  ;;  %1083 = vmatpush1.msra.mxu0 %v801_v51  ;;  %v1236_v25 = vpop.permute.xlu0 %1235 }
 0x1a9   : > { %1403 = vmatprep.subr.bf16.mxu1 %v1402_v4  ;;  %1427 = vmatprep.subr.bf16.mxu0 %v2326_v19 }
 0x1aa   : > { %861 = vmatmul.mubr.f32.vlgmr.msra.gmra.mrb[0].mxu1 %v2409_v60  ;;  %1140 = vmatmul.mubr.f32.vlgmr.msra.gmra.mrb[0].mxu0 %v2409_v60 }
 0x1ab   : > { %1405 = vmatpush1.bf16.msra.mxu1 %v1404_v54  ;;  %1429 = vmatpush1.bf16.msra.mxu0 %v2350_v48 }
 0x1ac   : > { %1407 = vmatprep.subr.bf16.mxu1 %v1406_v50  ;;  %1431 = vmatprep.subr.bf16.mxu0 %v2400_v16 }
 0x1ad   : > { %951 = vmatprep.mubr.f32.mxu1 %v1764_v11  ;;  %1220 = vmatprep.mubr.f32.mxu0 %v1764_v11 }
 0x1af   : > { %1409 = vmatpush1.bf16.msra.mxu1 %v1408_v7  ;;  %1433 = vmatpush1.bf16.msra.mxu0 %v2405_v37 }
 0x1b0   : > { %893 = vmatprep.subr.mxu1 %v794_v40  ;;  %1163 = vmatprep.subr.mxu0 %v675_v55 }
 0x1b3   : > { %896 = vmatpush1.msra.mxu1 %v800_v42  ;;  %1165 = vmatpush1.msra.mxu0 %v677_v23 }
 0x1b4   : > { %954 = vmatmul.mubr.f32.vlgmr.msra.gmra.mrb[0].mxu1 %v2414_v6  ;;  %1222 = vmatmul.mubr.f32.vlgmr.msra.gmra.mrb[0].mxu0 %v2409_v60 }
 0x287   : > { %v955_v19 = vpop.f32.mrb[0].mxu1  ;;  %v1223_v17 = vpop.f32.mrb[0].mxu0 }
 0x288   : > { %v1434_v4 = vadd.f32 %v1223_v17, %v955_v19  ;;  %v957_v43 = vpop.f32.mrb[1].mxu1  ;;  %v1225_v48 = vpop.f32.mrb[1].mxu0 }
 0x289   : > { %v1435_v11 = vadd.f32 %v1225_v48, %v957_v43 }
 0x28a   : > { %v1238_v54 = vadd.f32 %v1434_v4, %v1236_v25 }
 0x28b   : > { %v1239_v63 = vadd.f32 %v1435_v11, %v1236_v25 }
 0x28c   : > { %v1240_v44 = vmul.f32 0.5, %v1238_v54 }
 0x28d   : > { %v1241_v16 = vmul.f32 0.5, %v1239_v63 }
 0x28e   : > { %1558 = vtanh.f32 %v1240_v44 }
 0x28f   : > { %1560 = vtanh.f32 %v1241_v16 }
 0x298   : > { %v1559_v37 = vpop.eup %1558 }
 0x299   : > { %v1561_v62 = vpop.eup %1560  ;;  %v1244_v6 = vadd.f32 1.0, %v1559_v37 }
 0x29a   : > { %v1245_v60 = vadd.f32 1.0, %v1561_v62 }
 0x29b   : > { %v1246_v9 = vmul.f32 0.5, %v1244_v6 }
 0x29c   : > { %v1247_v12 = vmul.f32 0.5, %v1245_v60 }
 0x29d   : > { %v1248_v18 = vmul.f32 %v1246_v9, %v1238_v54 }
 0x29e   : > { %v1249_v1 = vmul.f32 %v1247_v12, %v1239_v63 }
 0x29f   : > { %1250 = vst [vmem:[%s227_s9] sm:$0xff] %v1248_v18 }
 0x2a0   : > { %1251 = vst [vmem:[%s227_s9 + $0x8] sm:$0xff] %v1249_v1 }
 0x2a1   : > { %1661 = shalt.err (!%p1658_p2)
}
 0x2a2   : > { %s1662_s30 = scalar_lea.hbm %s2480_s5, 256  ;;  %s1666_s8 = scalar_lea.hbm %s2532_s3, 512 }
 0x2a3   : > { %p1663_p8 = scmp.ne.s32.totalorder %s2480_s5, %s1662_s30  ;;  %p1667_p7 = scmp.lt.u32.totalorder %s2480_s5, %s2532_s3 }
 0x2a4   : > { %p1668_p12 = scmp.lt.u32.totalorder %s1666_s8, %s1662_s30  ;;  %p1670_p5 = scmp.lt.u32.totalorder %s1662_s30, %s2480_s5 }
 0x2a5   : > { %p1664_p13 = pnand %p1663_p8, %p2551_p10 }
 0x2a6   : > { %p1669_p3 = por %p1668_p12, %p1667_p7 }
 0x2a7   : > { %p1665_p4 = pneg %p1664_p13 }
 0x2a8   : > { %p1671_p11 = por %p1670_p5, %p1669_p3 }
 0x2aa   : > { %p1672_p1 = pnand %p1671_p11, %p1665_p4 }
 0x2ac   : > { %1675 = shalt.err (!%p1672_p1)
}
 0x2ad   : > { %1457 = dma.vmem_to_hbm [thread:$0]  (%p2551_p10), %s2482_s10, 256, %s2480_s5, %s1253_s6  }
 0x2ae PF: > { %s1281_s20 = sand.u32 1, %s1714_s12   ;;  %p2552_p0 = scmp.ne.s32.totalorder %s2543_s25, 0 }
 0x2af   : > { %p2553_p6 = scmp.ge.s32.totalorder %s1734_s17, 2  ;;  %s1282_s27 = scalar_lea.sflag [#allocation5], %s1281_s20 }
 0x2b1   : > { %p1471_p9 = pnand %p2553_p6, %p2552_p0 }
 0x2b3   : > { %1709 = dma.done.wait (!%p1471_p9), %s1282_s27, 256  }
 0x2b4   : > { %1711 = vsyncadd (!%p1471_p9), %s1282_s27, 4294967040  ;;  %s20_s17 = sadd.s32 1, %s1734_s17   ;;  %s2554_s12 = smov %s1718_s13 }
 0x2b5   : > { %p17_p2 = scmp.ge.s32.totalorder %s20_s17, 4   ;;  %s2555_s13 = smov %s1722_s14 }
 0x2b6   : > { %s2556_s14 = smov %s1935_s4  ;;  %s2557_s15 = smov %s1730_s16 }
 0x2b7   : > { %s2558_s16 = smov %s2560_s22  ;;  %19 = sbr.rel (!%p17_p2) target bundleno = 7 (0x7), region = 85 }
 0x2be   :  { %1287 = vsyncpa [#allocation4], 1 }
 0x2bf   :  { %1289 = vsyncpa [#allocation4 + $0x1], 1 }
 0x2c0   :  { %1290 = vsyncpa [#allocation7], 1 }
 0x2c1   :  { %1291 = vsyncpa [#allocation5], 1 }
 0x2c2   :  { %1293 = vsyncpa [#allocation5 + $0x1], 1 }

</bundles_post_ra>
